<compile_context>
chip_gen: v5e
topology: v5e:2x2
jax: 0.10.0
libtpu: 0.0.40
codegen_flags: <defaults>
</compile_context>

<pallas_src>
import functools

import jax
import jax.numpy as jnp
from jax.experimental import pallas as pl
from jax.experimental.pallas import tpu as pltpu


def _round_up(x: int, m: int) -> int:
    return (x + m - 1) // m * m


def _vmem_capacity_bytes() -> int:
    # 128 MiB per core on v5e/v6e, 64 MiB per TensorCore on v7x.  Fall back to the
    # smallest (v7x) figure if the query is unavailable.
    try:
        return int(pltpu.get_tpu_info().vmem_capacity_bytes)
    except Exception:
        return 64 * 1024 * 1024


def _linear_kernel(x_ref, w_ref, b_ref, o_ref):
    # x_ref: (tb, D), w_ref: (D, D) [out, in], b_ref: (1, D), o_ref: (tb, D)
    # y = x @ W^T + b: contract the "in" axis of both operands directly on the MXU
    # (no materialized transpose in the kernel), f32 accumulation.
    # NOTE(v5e): if a bundle dump ever shows a per-grid-step vxpose for this NT-form
    # matmul, pre-transpose W once in the wrapper instead (W is grid-resident, so the
    # one-time transpose is cheap relative to streaming x).
    # NOTE(compute-bound, D >~ 1.2k on v7x / ~2.6k on v6e): casting x/W to bf16 here
    # (keeping preferred_element_type=f32) buys 4-8x MXU throughput at a precision cost.
    y = jax.lax.dot_general(
        x_ref[...], w_ref[...],
        dimension_numbers=(((1,), (1,)), ((), ())),
        preferred_element_type=jnp.float32,
    )
    o_ref[...] = (y + b_ref[...]).astype(o_ref.dtype)


@functools.partial(jax.jit, static_argnames=("target_block_bytes", "pad_lanes"))
def identity_net_forward(x, weight, bias, *, target_block_bytes=2 * 1024 * 1024,
                         pad_lanes=False):
    """Pallas forward for IdentityNet. x: (B, D), weight: (D, D), bias: (D,)."""
    B, D = x.shape
    assert weight.shape == (D, D) and bias.shape == (D,)

    # --- optional lane-dense padding (D -> multiple of 128) -------------------
    if pad_lanes and D % 128 != 0:
        Dp = _round_up(D, 128)
        x_in = jnp.pad(x, ((0, 0), (0, Dp - D)))
        w_in = jnp.pad(weight, ((0, Dp - D), (0, Dp - D)))
        b_in = jnp.pad(bias, (0, Dp - D))
    else:
        Dp, x_in, w_in, b_in = D, x, weight, bias
    bias2d = b_in.reshape(1, Dp)  # glue reshape in plain JAX

    x_item = x.dtype.itemsize
    w_item = w_in.dtype.itemsize
    b_item = b_in.dtype.itemsize

    # --- byte-budget-driven batch tile (~2 MiB slabs, multiple-of-8 rows) -----
    row_bytes = max(Dp * x_item, 1)
    tb = max(8, (target_block_bytes // row_bytes) // 8 * 8)
    if B >= 32:
        # Keep >= ~4 grid steps when B is large: both v7x TensorCores get work on the
        # "parallel" axis and the pipeline has iterations to overlap DMA with compute.
        tb = min(tb, max(8, _round_up(pl.cdiv(B, 4), 8)))
    if tb >= B:
        tb = B  # one block spanning the full batch (block == full dim is always legal)
    # else: tb is a multiple of 8 (< B); the ragged last block is masked by Pallas,
    # so no wrapper-side jnp.pad (and no extra HBM pass over x) is needed.
    grid_b = pl.cdiv(B, tb)

    cost = pl.CostEstimate(
        flops=2 * B * Dp * Dp,
        transcendentals=0,
        bytes_accessed=2 * B * Dp * x_item + Dp * Dp * w_item + Dp * b_item,
    )

    # VMEM: the pipeline double-buffers every spec'd operand -- including the
    # "resident" weight/bias whose index_map is constant -- plus the x / o tiles.
    vmem_need = (2 * Dp * Dp * w_item          # weight: 2 pipeline buffers
                 + 2 * 2 * tb * Dp * x_item    # x and o tiles, double-buffered
                 + 2 * Dp * b_item)            # bias: 2 pipeline buffers
    vmem_cap = _vmem_capacity_bytes()          # per-generation, not a hard 64 MiB clamp
    vmem_limit = int(min(max(int(1.5 * vmem_need), 32 * 1024 * 1024),
                         int(0.9 * vmem_cap)))
    # TODO(synk): for very large D (2*D*D*w_item approaching the per-core VMEM budget,
    # roughly D >~ 2500 f32 on v7x / ~3500 on v5e & v6e) tile the weight along out/in
    # features with a pl.when-gated f32 accumulator instead of keeping it resident;
    # on v5e pick weight tiles in multiples of 128 (4x128x128 MXU).

    out = pl.pallas_call(
        _linear_kernel,
        out_shape=jax.ShapeDtypeStruct((B, Dp), x.dtype),
        grid_spec=pltpu.PrefetchScalarGridSpec(
            num_scalar_prefetch=0,
            grid=(grid_b,),
            in_specs=[
                pl.BlockSpec((tb, Dp), lambda i: (i, 0)),   # x: streamed per batch tile
                pl.BlockSpec((Dp, Dp), lambda i: (0, 0)),   # W: resident across the grid
                pl.BlockSpec((1, Dp), lambda i: (0, 0)),    # bias: resident
            ],
            out_specs=pl.BlockSpec((tb, Dp), lambda i: (i, 0)),
        ),
        compiler_params=pltpu.CompilerParams(
            dimension_semantics=("parallel",),  # batch tiles independent -> 2 TCs on v7x
            vmem_limit_bytes=vmem_limit,
        ),
        cost_estimate=cost,
    )(x_in, w_in, bias2d)

    return out if Dp == D else out[:, :D]


if __name__ == "__main__":
    # Small shapes consistent with the module: IdentityNet(input_size=32), batch=8.
    B, D = 8, 32

    key = jax.random.PRNGKey(0)
    x = jax.random.normal(key, (B, D), dtype=jnp.float32)

    # Deterministic parameter init exactly as in IdentityNet.__init__:
    # weight = eye(input_size), bias = zeros(input_size)
    weight = jnp.eye(D, dtype=jnp.float32)
    bias = jnp.zeros((D,), dtype=jnp.float32)

    y = jax.block_until_ready(identity_net_forward(x, weight, bias))
    assert y.shape == x.shape
    assert jnp.allclose(y, x, atol=1e-5), "IdentityNet output mismatch"

    # Also exercise the lane-dense (D padded to 128) path.
    y_pad = jax.block_until_ready(identity_net_forward(x, weight, bias, pad_lanes=True))
    assert y_pad.shape == x.shape
    assert jnp.allclose(y_pad, x, atol=1e-5), "IdentityNet (pad_lanes) output mismatch"

    print("KERNEL_OK")
</pallas_src>

<mosaic_0001>
module attributes {stable_mosaic.version = 11 : i64} {
  func.func @_linear_kernel(%arg0: i32, %arg1: memref<8x32xf32, #tpu.memory_space<vmem>>, %arg2: memref<32x32xf32, #tpu.memory_space<vmem>>, %arg3: memref<1x32xf32, #tpu.memory_space<vmem>>, %arg4: memref<8x32xf32, #tpu.memory_space<vmem>>) attributes {dimension_semantics = [#tpu.dimension_semantics<parallel>], iteration_bounds = array<i64: 1>, scalar_prefetch = 0 : i64, scratch_operands = 0 : i64, tpu.core_type = #tpu.core_type<tc>, window_params = [{transform_indices = @transform_0, window_bounds = array<i64: 8, 32>}, {pipeline_mode = #tpu.pipeline_mode<synchronous>, transform_indices = @transform_1, window_bounds = array<i64: 32, 32>}, {pipeline_mode = #tpu.pipeline_mode<synchronous>, transform_indices = @transform_2, window_bounds = array<i64: 1, 32>}, {transform_indices = @transform_3, window_bounds = array<i64: 8, 32>}]} {
    %c0 = arith.constant 0 : index
    %c0_0 = arith.constant 0 : index
    %0 = vector.load %arg1[%c0, %c0_0] : memref<8x32xf32, #tpu.memory_space<vmem>>, vector<8x32xf32>
    %c0_1 = arith.constant 0 : index
    %c0_2 = arith.constant 0 : index
    %1 = vector.load %arg2[%c0_1, %c0_2] : memref<32x32xf32, #tpu.memory_space<vmem>>, vector<32x32xf32>
    %cst = arith.constant dense<0.000000e+00> : vector<8x32xf32>
    %2 = tpu.matmul %0, %1, %cst {dimension_numbers = #tpu.dot_dimension_numbers<[1], [1], [0], [0], [0, 0, 1, 0], [], []>} : vector<8x32xf32>, vector<32x32xf32>, vector<8x32xf32> -> vector<8x32xf32>
    %c0_3 = arith.constant 0 : index
    %c0_4 = arith.constant 0 : index
    %3 = vector.load %arg3[%c0_3, %c0_4] : memref<1x32xf32, #tpu.memory_space<vmem>>, vector<1x32xf32>
    %4 = vector.broadcast %3 : vector<1x32xf32> to vector<8x32xf32>
    %5 = arith.addf %2, %4 : vector<8x32xf32>
    %c0_5 = arith.constant 0 : index
    %c0_6 = arith.constant 0 : index
    %6 = vector.load %arg4[%c0_5, %c0_6] : memref<8x32xf32, #tpu.memory_space<vmem>>, vector<8x32xf32>
    tpu.vector_store %arg4[%c0_5, %c0_6], %5 {strides = array<i32>} : memref<8x32xf32, #tpu.memory_space<vmem>>, vector<8x32xf32>,
    return
  }
  func.func @transform_0(%arg0: i32) -> (i32, i32) {
    %c0_i32 = arith.constant 0 : i32
    %c0_i32_0 = arith.constant 0 : i32
    return %arg0, %c0_i32 : i32, i32
  }
  func.func @transform_1(%arg0: i32) -> (i32, i32) {
    %c0_i32 = arith.constant 0 : i32
    %c0_i32_0 = arith.constant 0 : i32
    %c0_i32_1 = arith.constant 0 : i32
    return %c0_i32, %c0_i32_0 : i32, i32
  }
  func.func @transform_2(%arg0: i32) -> (i32, i32) {
    %c0_i32 = arith.constant 0 : i32
    %c0_i32_0 = arith.constant 0 : i32
    %c0_i32_1 = arith.constant 0 : i32
    return %c0_i32, %c0_i32_0 : i32, i32
  }
  func.func @transform_3(%arg0: i32) -> (i32, i32) {
    %c0_i32 = arith.constant 0 : i32
    %c0_i32_0 = arith.constant 0 : i32
    return %arg0, %c0_i32 : i32, i32
  }
}

</mosaic_0001>

<bundles_post_ra>
// kernel: identity_net_forward.1
= control target key start
LH: loop header
LB: loop body
LE: loop exit
PB: predicated region body
PF: predicated region fallthrough
CT: control target
= control target key end

     0   :  { %8 = vsyncpa [#allocation3], 0  ;;  %s241_s0 = inlined_call_operand.hbm [shape: f32[8,32], index: 0, kind: input, shape index: {}]   ;;  %s242_s1 = inlined_call_operand.hbm [shape: f32[32,32], index: 1, kind: input, shape index: {}]   ;;  %s243_s2 = inlined_call_operand.vmem [shape: f32[1,32], index: 2, kind: input, shape index: {}]   ;;  %s244_s3 = inlined_call_operand.hbm [shape: f32[8,32], index: 3, kind: output, shape index: {}]  }
   0x1   :  { %9 = vsyncpa [#allocation6], 0 }
   0x2   :  { %10 = vsyncpa [#allocation4], 0  ;;  %s16_s14 = sshll.u32 %s241_s0, 4  ;;  %s198_s15 = smov [#allocation2]   ;;  %s17_s14 = int_to_ptr.hbm [resolvable:$true] %s16_s14 }
   0x3   :  { %s18_s16 = sshll.u32 %s198_s15, 4  ;;  %s26_s19 = sshll.u32 %s242_s1, 4  ;;  %s19_s16 = int_to_ptr.vmem [resolvable:$true] %s18_s16  ;;  %s27_s19 = int_to_ptr.hbm [resolvable:$true] %s26_s19 }
   0x4   :  { %21 = dma.hbm_to_vmem [thread:$0]  %s17_s14, 128, %s19_s16, [#allocation3]  }
   0x5   :  { %s199_s20 = smov [#allocation5]   ;;  %s200_s22 = smov 128  }
   0x6   :  { %s28_s21 = sshll.u32 %s199_s20, 4  ;;  %s201_s23 = smov 8   ;;  %s29_s21 = int_to_ptr.vmem [resolvable:$true] %s28_s21 }
   0x7   :  { %34 = dma.hbm_to_vmem [thread:$0]  %s27_s19, 512, %s29_s21, [#allocation6], %s200_s22, %s200_s22, %s201_s23  }
   0x8   :  { %192 = dma.done.wait [#allocation3], 128  }
   0x9   :  { %193 = vsyncadd [#allocation3], 4294967168 }
   0xa   :  { %194 = dma.done.wait [#allocation6], 512  }
   0xb   :  { %195 = vsyncadd [#allocation6], 4294966784  ;;  %vm54_vm0 = vcmask 261120   ;;  %v49_v0 = vld [vmem:[#allocation5 + $0x18] sm:$0xff]  ;;  %v48_v1 = vld [vmem:[#allocation5 + $0x10] sm:$0xff]  ;;  %s202_s24 = smov [#allocation7]  }
   0xc   :  { %109 = vmatpush.xpose.msk.msra.mxu0 %vm54_vm0, %v49_v0  ;;  %v47_v2 = vld [vmem:[#allocation5 + $0x8] sm:$0xff]  ;;  %v46_v3 = vld [vmem:[#allocation5] sm:$0xff]  ;;  %v45_v4 = vld [vmem:[#allocation2] sm:$0xff]  ;;  %s96_s25 = sshll.u32 %s202_s24, 4  ;;  %s98_s28 = sshll.u32 %s244_s3, 4  ;;  %s97_s25 = int_to_ptr.vmem [resolvable:$true] %s96_s25  ;;  %s99_s28 = int_to_ptr.hbm [resolvable:$true] %s98_s28 }
   0xd   :  { %v119_v5 = vld [vmem:[%s243_s2] ss:$0 sm:$0xff] }
  0x10   :  { %110 = vmatpush.xpose.msk.msra.mxu0 %vm54_vm0, %v48_v1 }
  0x14   :  { %111 = vmatpush.xpose.msk.msra.mxu0 %vm54_vm0, %v47_v2 }
  0x18   :  { %112 = vmatpush.xpose.msk.msra.mxu0 %vm54_vm0, %v46_v3 }
  0x1b   :  { %113 = vmatmul.msk.f32.vlgmr.msra.gmra.mxu0 %vm54_vm0, %v45_v4 }
  0x98   :  { %v87_v6 = vpop.f32.mrf.mxu0 }
  0x99   :  { %v88_v7 = vadd.f32 %v119_v5, %v87_v6 }
  0x9b   :  { %90 = vst.msk [vmem:[#allocation7] sm:$0xff] %vm54_vm0, %v88_v7 }
  0x9c   :  { %101 = dma.vmem_to_hbm [thread:$0]  %s97_s25, 128, %s99_s28, [#allocation4]  }
  0x9d   :  { %196 = dma.done.wait [#allocation4], 128  }
  0x9e   :  { %197 = vsyncadd [#allocation4], 4294967168 }
  0x9f   :  { %106 = vsyncpa [#allocation3], 1 }
  0xa0   :  { %107 = vsyncpa [#allocation6], 1 }
  0xa1   :  { %108 = vsyncpa [#allocation4], 1 }

</bundles_post_ra>
